<compile_context>
chip_gen: v6e
topology: v6e:2x2x1
jax: 0.10.0
libtpu: 0.0.40
codegen_flags: <defaults>
</compile_context>

<pallas_src>
import functools

import jax
import jax.numpy as jnp
from jax.experimental import pallas as pl
from jax.experimental.pallas import tpu as pltpu


# ----------------------------------------------------------------------------
# Fused kernel: conv (im2col matmul) + ReLU + GAP (ones matmul) + 3-layer head
# ----------------------------------------------------------------------------
def fused_siamese_kernel(p_ref, wc_ref, bc_ref, pool_ref,
                         w1a_ref, w1b_ref, b1_ref, w2_ref, b2_ref,
                         w3_ref, b3_ref, out_ref, feat_ref, feats_scr,
                         *, inv_hw):
    # Grid: s in {0, 1} — image slot (img1 batch, then img2 batch).
    # p_ref    : [B*HW, Kpad] bf16   im2col patches of the current slot (pipelined)
    # wc_ref   : [Kpad, F]    bf16   conv weight (zero-padded rows), resident
    # bc_ref   : [1, F]       f32    conv bias
    # pool_ref : [B, B*HW]    bf16   block-diagonal ones (mean = dot * inv_hw in f32)
    # w1a/w1b  : [F, 512]     bf16   first head layer split so that
    #                                concat([f1, f2]) @ W1 == f1 @ W1a + f2 @ W1b
    # w2_ref   : [512, 128]   bf16   second head layer, lane-padded 64 -> 128
    # w3_ref   : [128, 128]   bf16   fc layer, padded 64x1 -> 128x128
    # out_ref  : [B, 128] f32 (logit in lane 0); feat_ref: [B, 128] f32 (feature in 0:64)
    # feats_scr: [2, B, F] f32 VMEM scratch holding the per-slot pooled features
    s = pl.program_id(0)

    # Backbone conv3x3 as one MXU matmul for this slot; bias + ReLU in f32.
    act = jnp.dot(p_ref[...], wc_ref[...], preferred_element_type=jnp.float32)
    act = jnp.maximum(act + bc_ref[...], 0.0)                          # [B*HW, F] f32

    # Global average pooling as a block-diagonal bf16 ones matmul (MXU, not XLU);
    # the mean scale stays in f32.
    pooled = jnp.dot(pool_ref[...], act.astype(jnp.bfloat16),
                     preferred_element_type=jnp.float32) * inv_hw      # [B, F] f32
    feats_scr[s] = pooled

    # cls_feature_head + fc run once, after both slots' features are available.
    @pl.when(s == pl.num_programs(0) - 1)
    def _():
        f1 = feats_scr[0]                                              # [B, F] img1 features
        f2 = feats_scr[1]                                              # [B, F] img2 features
        h1 = (jnp.dot(f1.astype(jnp.bfloat16), w1a_ref[...],
                      preferred_element_type=jnp.float32)
              + jnp.dot(f2.astype(jnp.bfloat16), w1b_ref[...],
                        preferred_element_type=jnp.float32)
              + b1_ref[...])
        h1 = jnp.maximum(h1, 0.0)                                      # [B, 512]
        h2 = jnp.dot(h1.astype(jnp.bfloat16), w2_ref[...],
                     preferred_element_type=jnp.float32) + b2_ref[...]
        h2 = jnp.maximum(h2, 0.0)                                      # [B, 128]; lanes >= 64 are 0
        feat_ref[...] = h2                                             # full-width (lane-dense) store
        out_ref[...] = (jnp.dot(h2.astype(jnp.bfloat16), w3_ref[...],
                                preferred_element_type=jnp.float32) + b3_ref[...])


# ----------------------------------------------------------------------------
# Plain-JAX glue: NCHW -> NHWC, spatial pad, im2col patch extraction (bf16, K-padded)
# ----------------------------------------------------------------------------
def im2col_3x3(x_nchw, k_pad):
    # TODO(synk): im2col stays as XLA glue; in-kernel extraction would need awkward
    # strided 4D slicing for Cin=3 — revisit if scaled to real ResNet-sized inputs.
    x = jnp.transpose(x_nchw, (0, 2, 3, 1)).astype(jnp.bfloat16)       # NCHW -> NHWC, bf16
    xp = jnp.pad(x, ((0, 0), (1, 1), (1, 1), (0, 0)))
    n, hp, wp, c = xp.shape
    h, w = hp - 2, wp - 2
    cols = [xp[:, kh:kh + h, kw:kw + w, :] for kh in range(3) for kw in range(3)]
    extra = k_pad - 9 * c
    if extra > 0:                                                      # fold K padding into concat
        cols.append(jnp.zeros((n, h, w, extra), jnp.bfloat16))
    patches = jnp.concatenate(cols, axis=-1)                           # [n, h, w, k_pad]
    return patches.reshape(n, h * w, k_pad)


def _round_up(x, m):
    return (x + m - 1) // m * m


@jax.jit
def siamese_feature_forward(img1, img2, params):
    B, Cin = img1.shape[0], img1.shape[1]
    K = 9 * Cin
    Kpad = _round_up(K, 32)

    # One im2col pass over BOTH images (rows: img1 batch first, then img2 batch).
    patches = im2col_3x3(jnp.concatenate([img1, img2], axis=0), Kpad)  # [2B, HW, Kpad] bf16
    HW = patches.shape[1]
    patches = patches.reshape(2 * B * HW, Kpad)

    F = params["w_conv"].shape[1]
    hid1 = params["w1"].shape[1]
    feat_dim = params["w2"].shape[1]
    out_dim = params["w3"].shape[1]
    feat_pad = _round_up(feat_dim, 128)
    out_pad = _round_up(out_dim, 128)

    wc = jnp.pad(params["w_conv"], ((0, Kpad - K), (0, 0))).astype(jnp.bfloat16)
    bc = params["b_conv"].astype(jnp.float32)

    # Per-slot block-diagonal ones pooling matrix (bf16); 1/HW applied in-kernel in f32.
    row_img = jnp.arange(B * HW, dtype=jnp.int32) // HW
    pool = (row_img[None, :] == jnp.arange(B, dtype=jnp.int32)[:, None]
            ).astype(jnp.bfloat16)                                     # [B, B*HW]

    # Head weights: W1 split so the feature concat never materializes in-kernel;
    # last two layers lane-padded to 128 for full-width output stores.
    w1a = params["w1"][:F].astype(jnp.bfloat16)
    w1b = params["w1"][F:].astype(jnp.bfloat16)
    b1 = params["b1"].astype(jnp.float32)
    w2p = jnp.pad(params["w2"], ((0, 0), (0, feat_pad - feat_dim))).astype(jnp.bfloat16)
    b2p = jnp.pad(params["b2"], ((0, 0), (0, feat_pad - feat_dim))).astype(jnp.float32)
    w3p = jnp.pad(params["w3"], ((0, feat_pad - feat_dim), (0, out_pad - out_dim))
                  ).astype(jnp.bfloat16)
    b3p = jnp.pad(params["b3"], ((0, 0), (0, out_pad - out_dim))).astype(jnp.float32)

    def const2d(shape):                                                # resident (same block every step)
        return pl.BlockSpec(shape, lambda s: (0, 0))

    grid_spec = pltpu.PrefetchScalarGridSpec(
        num_scalar_prefetch=0,
        grid=(2,),
        in_specs=[
            pl.BlockSpec((B * HW, Kpad), lambda s: (s, 0)),            # patches: pipelined per slot
            const2d((Kpad, F)),                                        # conv weight
            const2d((1, F)),                                           # conv bias
            const2d((B, B * HW)),                                      # pooling ones
            const2d((F, hid1)),                                        # w1a
            const2d((F, hid1)),                                        # w1b
            const2d((1, hid1)),                                        # b1
            const2d((hid1, feat_pad)),                                 # w2 (lane-padded)
            const2d((1, feat_pad)),                                    # b2
            const2d((feat_pad, out_pad)),                              # w3 (padded)
            const2d((1, out_pad)),                                     # b3
        ],
        out_specs=(const2d((B, out_pad)), const2d((B, feat_pad))),
        scratch_shapes=[pltpu.VMEM((2, B, F), jnp.float32)],
    )

    # TODO(synk): on v7x megacore the backbone portion could be marked "parallel"
    # with the head split into a second tiny call; kept fully fused + "arbitrary"
    # here because the feature scratch carry makes "parallel" incorrect in one call.
    out_slab, feat_slab = pl.pallas_call(
        functools.partial(fused_siamese_kernel, inv_hw=1.0 / HW),
        out_shape=(jax.ShapeDtypeStruct((B, out_pad), jnp.float32),    # logits slab
                   jax.ShapeDtypeStruct((B, feat_pad), jnp.float32)),  # feature slab
        grid_spec=grid_spec,
        compiler_params=pltpu.CompilerParams(dimension_semantics=("arbitrary",)),
    )(patches, wc, bc, pool, w1a, w1b, b1, w2p, b2p, w3p, b3p)

    return out_slab[:, :out_dim], feat_slab[:, :feat_dim]


# ----------------------------------------------------------------------------
# Pure-JAX reference mirroring the kernel's bf16-operand / f32-accumulate math
# ----------------------------------------------------------------------------
def reference_forward(img1, img2, params):
    def backbone(img):
        p = im2col_3x3(img, 9 * img.shape[1])              # [B, HW, K] bf16
        wc = params["w_conv"].astype(jnp.bfloat16)
        act = jnp.dot(p.reshape(-1, p.shape[-1]), wc,
                      preferred_element_type=jnp.float32)
        act = jnp.maximum(act.reshape(p.shape[0], p.shape[1], -1)
                          + params["b_conv"], 0.0)
        # Kernel pools a bf16 copy of the activations (f32 accumulate / f32 scale).
        return act.astype(jnp.bfloat16).astype(jnp.float32).mean(axis=1)   # [B, F]

    f1, f2 = backbone(img1), backbone(img2)
    c = jnp.concatenate([f1, f2], axis=-1).astype(jnp.bfloat16)
    h1 = jnp.maximum(jnp.dot(c, params["w1"].astype(jnp.bfloat16),
                             preferred_element_type=jnp.float32) + params["b1"], 0.0)
    h2 = jnp.maximum(jnp.dot(h1.astype(jnp.bfloat16),
                             params["w2"].astype(jnp.bfloat16),
                             preferred_element_type=jnp.float32) + params["b2"], 0.0)
    out = jnp.dot(h2.astype(jnp.bfloat16), params["w3"].astype(jnp.bfloat16),
                  preferred_element_type=jnp.float32) + params["b3"]
    return out, h2


if __name__ == "__main__":
    # Small shapes consistent with the module: img = [B, 3, H, W]
    B, Cin, H, W = 2, 3, 16, 16
    F = 32                      # synthetic backbone feature dim (resnet would be 2048)
    H1, H2, OUT = 512, 64, 1    # cls_head dims from the module definition

    key = jax.random.PRNGKey(0)
    k = jax.random.split(key, 10)

    img1 = jax.random.normal(k[0], (B, Cin, H, W), jnp.float32)
    img2 = jax.random.normal(k[1], (B, Cin, H, W), jnp.float32)

    # Deterministic synthetic parameters (no checkpoint loading).
    w_conv = (jax.random.normal(k[2], (3, 3, Cin, F), jnp.float32) * 0.1).reshape(9 * Cin, F)
    b_conv = jax.random.normal(k[3], (1, F), jnp.float32) * 0.01
    params = dict(
        w_conv=w_conv, b_conv=b_conv,
        w1=jax.random.normal(k[4], (2 * F, H1), jnp.float32) * 0.05,
        b1=jax.random.normal(k[5], (1, H1), jnp.float32) * 0.01,
        w2=jax.random.normal(k[6], (H1, H2), jnp.float32) * 0.05,
        b2=jax.random.normal(k[7], (1, H2), jnp.float32) * 0.01,
        w3=jax.random.normal(k[8], (H2, OUT), jnp.float32) * 0.05,
        b3=jax.random.normal(k[9], (1, OUT), jnp.float32) * 0.01,
    )

    output, feature = siamese_feature_forward(img1, img2, params)
    jax.block_until_ready((output, feature))

    ref_out, ref_feat = reference_forward(img1, img2, params)
    assert output.shape == (B, OUT) and feature.shape == (B, H2)
    assert jnp.allclose(output, ref_out, atol=1e-2, rtol=1e-2)
    assert jnp.allclose(feature, ref_feat, atol=1e-2, rtol=1e-2)

    print("KERNEL_OK")
</pallas_src>

<mosaic_0001>
module attributes {stable_mosaic.version = 11 : i64} {
  func.func @fused_siamese_kernel(%arg0: i32, %arg1: memref<512x32xbf16, #tpu.memory_space<vmem>>, %arg2: memref<32x32xbf16, #tpu.memory_space<vmem>>, %arg3: memref<1x32xf32, #tpu.memory_space<vmem>>, %arg4: memref<2x512xbf16, #tpu.memory_space<vmem>>, %arg5: memref<32x512xbf16, #tpu.memory_space<vmem>>, %arg6: memref<32x512xbf16, #tpu.memory_space<vmem>>, %arg7: memref<1x512xf32, #tpu.memory_space<vmem>>, %arg8: memref<512x128xbf16, #tpu.memory_space<vmem>>, %arg9: memref<1x128xf32, #tpu.memory_space<vmem>>, %arg10: memref<128x128xbf16, #tpu.memory_space<vmem>>, %arg11: memref<1x128xf32, #tpu.memory_space<vmem>>, %arg12: memref<2x128xf32, #tpu.memory_space<vmem>>, %arg13: memref<2x128xf32, #tpu.memory_space<vmem>>, %arg14: memref<2x2x32xf32, #tpu.memory_space<vmem>>) attributes {dimension_semantics = [#tpu.dimension_semantics<arbitrary>], iteration_bounds = array<i64: 2>, scalar_prefetch = 0 : i64, scratch_operands = 1 : i64, tpu.core_type = #tpu.core_type<tc>, window_params = [{transform_indices = @transform_0, window_bounds = array<i64: 512, 32>}, {pipeline_mode = #tpu.pipeline_mode<synchronous>, transform_indices = @transform_1, window_bounds = array<i64: 32, 32>}, {pipeline_mode = #tpu.pipeline_mode<synchronous>, transform_indices = @transform_2, window_bounds = array<i64: 1, 32>}, {pipeline_mode = #tpu.pipeline_mode<synchronous>, transform_indices = @transform_3, window_bounds = array<i64: 2, 512>}, {pipeline_mode = #tpu.pipeline_mode<synchronous>, transform_indices = @transform_4, window_bounds = array<i64: 32, 512>}, {pipeline_mode = #tpu.pipeline_mode<synchronous>, transform_indices = @transform_5, window_bounds = array<i64: 32, 512>}, {pipeline_mode = #tpu.pipeline_mode<synchronous>, transform_indices = @transform_6, window_bounds = array<i64: 1, 512>}, {pipeline_mode = #tpu.pipeline_mode<synchronous>, transform_indices = @transform_7, window_bounds = array<i64: 512, 128>}, {pipeline_mode = #tpu.pipeline_mode<synchronous>, transform_indices = @transform_8, window_bounds = array<i64: 1, 128>}, {pipeline_mode = #tpu.pipeline_mode<synchronous>, transform_indices = @transform_9, window_bounds = array<i64: 128, 128>}, {pipeline_mode = #tpu.pipeline_mode<synchronous>, transform_indices = @transform_10, window_bounds = array<i64: 1, 128>}, {pipeline_mode = #tpu.pipeline_mode<synchronous>, transform_indices = @transform_11, window_bounds = array<i64: 2, 128>}, {pipeline_mode = #tpu.pipeline_mode<synchronous>, transform_indices = @transform_12, window_bounds = array<i64: 2, 128>}]} {
    %c0 = arith.constant 0 : index
    %c0_0 = arith.constant 0 : index
    %0 = vector.load %arg1[%c0, %c0_0] : memref<512x32xbf16, #tpu.memory_space<vmem>>, vector<512x32xbf16>
    %c0_1 = arith.constant 0 : index
    %c0_2 = arith.constant 0 : index
    %1 = vector.load %arg2[%c0_1, %c0_2] : memref<32x32xbf16, #tpu.memory_space<vmem>>, vector<32x32xbf16>
    %cst = arith.constant dense<0.000000e+00> : vector<512x32xf32>
    %2 = tpu.matmul %0, %1, %cst {dimension_numbers = #tpu.dot_dimension_numbers<[1], [0], [0], [1], [0, 0, 1, 1], [], []>} : vector<512x32xbf16>, vector<32x32xbf16>, vector<512x32xf32> -> vector<512x32xf32>
    %c0_3 = arith.constant 0 : index
    %c0_4 = arith.constant 0 : index
    %3 = vector.load %arg3[%c0_3, %c0_4] : memref<1x32xf32, #tpu.memory_space<vmem>>, vector<1x32xf32>
    %4 = vector.broadcast %3 : vector<1x32xf32> to vector<512x32xf32>
    %5 = arith.addf %2, %4 : vector<512x32xf32>
    %cst_5 = arith.constant 0.000000e+00 : f32
    %6 = vector.broadcast %cst_5 : f32 to vector<512x32xf32>
    %7 = arith.maximumf %5, %6 : vector<512x32xf32>
    %c0_6 = arith.constant 0 : index
    %c0_7 = arith.constant 0 : index
    %8 = vector.load %arg4[%c0_6, %c0_7] : memref<2x512xbf16, #tpu.memory_space<vmem>>, vector<2x512xbf16>
    %9 = arith.truncf %7 : vector<512x32xf32> to vector<512x32xbf16>
    %cst_8 = arith.constant dense<0.000000e+00> : vector<2x32xf32>
    %10 = tpu.matmul %8, %9, %cst_8 {dimension_numbers = #tpu.dot_dimension_numbers<[1], [0], [0], [1], [0, 0, 1, 1], [], []>} : vector<2x512xbf16>, vector<512x32xbf16>, vector<2x32xf32> -> vector<2x32xf32>
    %cst_9 = arith.constant 3.906250e-03 : f32
    %11 = vector.broadcast %cst_9 : f32 to vector<2x32xf32>
    %12 = arith.mulf %10, %11 : vector<2x32xf32>
    %13 = arith.index_cast %arg0 : i32 to index
    %c0_10 = arith.constant 0 : index
    %c0_11 = arith.constant 0 : index
    %14 = vector.load %arg14[%13, %c0_10, %c0_11] : memref<2x2x32xf32, #tpu.memory_space<vmem>>, vector<1x2x32xf32>
    %15 = vector.shape_cast %14 : vector<1x2x32xf32> to vector<2x32xf32>
    %16 = vector.shape_cast %12 : vector<2x32xf32> to vector<1x2x32xf32>
    tpu.vector_store %arg14[%13, %c0_10, %c0_11], %16 {strides = array<i32>} : memref<2x2x32xf32, #tpu.memory_space<vmem>>, vector<1x2x32xf32>,
    %c1_i32 = arith.constant 1 : i32
    %17 = arith.cmpi eq, %arg0, %c1_i32 : i32
    %18 = arith.extui %17 : i1 to i32
    %c0_i32 = arith.constant 0 : i32
    %19 = arith.cmpi ne, %18, %c0_i32 : i32
    scf.if %19 {
      %c0_12 = arith.constant 0 : index
      %c0_13 = arith.constant 0 : index
      %c0_14 = arith.constant 0 : index
      %20 = vector.load %arg14[%c0_12, %c0_13, %c0_14] : memref<2x2x32xf32, #tpu.memory_space<vmem>>, vector<1x2x32xf32>
      %21 = vector.shape_cast %20 : vector<1x2x32xf32> to vector<2x32xf32>
      %c1 = arith.constant 1 : index
      %c0_15 = arith.constant 0 : index
      %c0_16 = arith.constant 0 : index
      %22 = vector.load %arg14[%c1, %c0_15, %c0_16] : memref<2x2x32xf32, #tpu.memory_space<vmem>>, vector<1x2x32xf32>
      %23 = vector.shape_cast %22 : vector<1x2x32xf32> to vector<2x32xf32>
      %24 = arith.truncf %21 : vector<2x32xf32> to vector<2x32xbf16>
      %c0_17 = arith.constant 0 : index
      %c0_18 = arith.constant 0 : index
      %25 = vector.load %arg5[%c0_17, %c0_18] : memref<32x512xbf16, #tpu.memory_space<vmem>>, vector<32x512xbf16>
      %cst_19 = arith.constant dense<0.000000e+00> : vector<2x512xf32>
      %26 = tpu.matmul %24, %25, %cst_19 {dimension_numbers = #tpu.dot_dimension_numbers<[1], [0], [0], [1], [0, 0, 1, 1], [], []>} : vector<2x32xbf16>, vector<32x512xbf16>, vector<2x512xf32> -> vector<2x512xf32>
      %27 = arith.truncf %23 : vector<2x32xf32> to vector<2x32xbf16>
      %c0_20 = arith.constant 0 : index
      %c0_21 = arith.constant 0 : index
      %28 = vector.load %arg6[%c0_20, %c0_21] : memref<32x512xbf16, #tpu.memory_space<vmem>>, vector<32x512xbf16>
      %cst_22 = arith.constant dense<0.000000e+00> : vector<2x512xf32>
      %29 = tpu.matmul %27, %28, %cst_22 {dimension_numbers = #tpu.dot_dimension_numbers<[1], [0], [0], [1], [0, 0, 1, 1], [], []>} : vector<2x32xbf16>, vector<32x512xbf16>, vector<2x512xf32> -> vector<2x512xf32>
      %30 = arith.addf %26, %29 : vector<2x512xf32>
      %c0_23 = arith.constant 0 : index
      %c0_24 = arith.constant 0 : index
      %31 = vector.load %arg7[%c0_23, %c0_24] : memref<1x512xf32, #tpu.memory_space<vmem>>, vector<1x512xf32>
      %32 = vector.broadcast %31 : vector<1x512xf32> to vector<2x512xf32>
      %33 = arith.addf %30, %32 : vector<2x512xf32>
      %cst_25 = arith.constant 0.000000e+00 : f32
      %34 = vector.broadcast %cst_25 : f32 to vector<2x512xf32>
      %35 = arith.maximumf %33, %34 : vector<2x512xf32>
      %36 = arith.truncf %35 : vector<2x512xf32> to vector<2x512xbf16>
      %c0_26 = arith.constant 0 : index
      %c0_27 = arith.constant 0 : index
      %37 = vector.load %arg8[%c0_26, %c0_27] : memref<512x128xbf16, #tpu.memory_space<vmem>>, vector<512x128xbf16>
      %cst_28 = arith.constant dense<0.000000e+00> : vector<2x128xf32>
      %38 = tpu.matmul %36, %37, %cst_28 {dimension_numbers = #tpu.dot_dimension_numbers<[1], [0], [0], [1], [0, 0, 1, 1], [], []>} : vector<2x512xbf16>, vector<512x128xbf16>, vector<2x128xf32> -> vector<2x128xf32>
      %c0_29 = arith.constant 0 : index
      %c0_30 = arith.constant 0 : index
      %39 = vector.load %arg9[%c0_29, %c0_30] : memref<1x128xf32, #tpu.memory_space<vmem>>, vector<1x128xf32>
      %40 = vector.broadcast %39 : vector<1x128xf32> to vector<2x128xf32>
      %41 = arith.addf %38, %40 : vector<2x128xf32>
      %cst_31 = arith.constant 0.000000e+00 : f32
      %42 = vector.broadcast %cst_31 : f32 to vector<2x128xf32>
      %43 = arith.maximumf %41, %42 : vector<2x128xf32>
      %c0_32 = arith.constant 0 : index
      %c0_33 = arith.constant 0 : index
      %44 = vector.load %arg13[%c0_32, %c0_33] : memref<2x128xf32, #tpu.memory_space<vmem>>, vector<2x128xf32>
      tpu.vector_store %arg13[%c0_32, %c0_33], %43 {strides = array<i32>} : memref<2x128xf32, #tpu.memory_space<vmem>>, vector<2x128xf32>,
      %45 = arith.truncf %43 : vector<2x128xf32> to vector<2x128xbf16>
      %c0_34 = arith.constant 0 : index
      %c0_35 = arith.constant 0 : index
      %46 = vector.load %arg10[%c0_34, %c0_35] : memref<128x128xbf16, #tpu.memory_space<vmem>>, vector<128x128xbf16>
      %cst_36 = arith.constant dense<0.000000e+00> : vector<2x128xf32>
      %47 = tpu.matmul %45, %46, %cst_36 {dimension_numbers = #tpu.dot_dimension_numbers<[1], [0], [0], [1], [0, 0, 1, 1], [], []>} : vector<2x128xbf16>, vector<128x128xbf16>, vector<2x128xf32> -> vector<2x128xf32>
      %c0_37 = arith.constant 0 : index
      %c0_38 = arith.constant 0 : index
      %48 = vector.load %arg11[%c0_37, %c0_38] : memref<1x128xf32, #tpu.memory_space<vmem>>, vector<1x128xf32>
      %49 = vector.broadcast %48 : vector<1x128xf32> to vector<2x128xf32>
      %50 = arith.addf %47, %49 : vector<2x128xf32>
      %c0_39 = arith.constant 0 : index
      %c0_40 = arith.constant 0 : index
      %51 = vector.load %arg12[%c0_39, %c0_40] : memref<2x128xf32, #tpu.memory_space<vmem>>, vector<2x128xf32>
      tpu.vector_store %arg12[%c0_39, %c0_40], %50 {strides = array<i32>} : memref<2x128xf32, #tpu.memory_space<vmem>>, vector<2x128xf32>,
    } else {
    }
    return
  }
  func.func @transform_0(%arg0: i32) -> (i32, i32) {
    %c0_i32 = arith.constant 0 : i32
    %c0_i32_0 = arith.constant 0 : i32
    return %arg0, %c0_i32 : i32, i32
  }
  func.func @transform_1(%arg0: i32) -> (i32, i32) {
    %c0_i32 = arith.constant 0 : i32
    %c0_i32_0 = arith.constant 0 : i32
    %c0_i32_1 = arith.constant 0 : i32
    return %c0_i32, %c0_i32_0 : i32, i32
  }
  func.func @transform_2(%arg0: i32) -> (i32, i32) {
    %c0_i32 = arith.constant 0 : i32
    %c0_i32_0 = arith.constant 0 : i32
    %c0_i32_1 = arith.constant 0 : i32
    return %c0_i32, %c0_i32_0 : i32, i32
  }
  func.func @transform_3(%arg0: i32) -> (i32, i32) {
    %c0_i32 = arith.constant 0 : i32
    %c0_i32_0 = arith.constant 0 : i32
    %c0_i32_1 = arith.constant 0 : i32
    return %c0_i32, %c0_i32_0 : i32, i32
  }
  func.func @transform_4(%arg0: i32) -> (i32, i32) {
    %c0_i32 = arith.constant 0 : i32
    %c0_i32_0 = arith.constant 0 : i32
    %c0_i32_1 = arith.constant 0 : i32
    return %c0_i32, %c0_i32_0 : i32, i32
  }
  func.func @transform_5(%arg0: i32) -> (i32, i32) {
    %c0_i32 = arith.constant 0 : i32
    %c0_i32_0 = arith.constant 0 : i32
    %c0_i32_1 = arith.constant 0 : i32
    return %c0_i32, %c0_i32_0 : i32, i32
  }
  func.func @transform_6(%arg0: i32) -> (i32, i32) {
    %c0_i32 = arith.constant 0 : i32
    %c0_i32_0 = arith.constant 0 : i32
    %c0_i32_1 = arith.constant 0 : i32
    return %c0_i32, %c0_i32_0 : i32, i32
  }
  func.func @transform_7(%arg0: i32) -> (i32, i32) {
    %c0_i32 = arith.constant 0 : i32
    %c0_i32_0 = arith.constant 0 : i32
    %c0_i32_1 = arith.constant 0 : i32
    return %c0_i32, %c0_i32_0 : i32, i32
  }
  func.func @transform_8(%arg0: i32) -> (i32, i32) {
    %c0_i32 = arith.constant 0 : i32
    %c0_i32_0 = arith.constant 0 : i32
    %c0_i32_1 = arith.constant 0 : i32
    return %c0_i32, %c0_i32_0 : i32, i32
  }
  func.func @transform_9(%arg0: i32) -> (i32, i32) {
    %c0_i32 = arith.constant 0 : i32
    %c0_i32_0 = arith.constant 0 : i32
    %c0_i32_1 = arith.constant 0 : i32
    return %c0_i32, %c0_i32_0 : i32, i32
  }
  func.func @transform_10(%arg0: i32) -> (i32, i32) {
    %c0_i32 = arith.constant 0 : i32
    %c0_i32_0 = arith.constant 0 : i32
    %c0_i32_1 = arith.constant 0 : i32
    return %c0_i32, %c0_i32_0 : i32, i32
  }
  func.func @transform_11(%arg0: i32) -> (i32, i32) {
    %c0_i32 = arith.constant 0 : i32
    %c0_i32_0 = arith.constant 0 : i32
    %c0_i32_1 = arith.constant 0 : i32
    return %c0_i32, %c0_i32_0 : i32, i32
  }
  func.func @transform_12(%arg0: i32) -> (i32, i32) {
    %c0_i32 = arith.constant 0 : i32
    %c0_i32_0 = arith.constant 0 : i32
    %c0_i32_1 = arith.constant 0 : i32
    return %c0_i32, %c0_i32_0 : i32, i32
  }
}

</mosaic_0001>

<bundles_post_ra>
// kernel: siamese_feature_forward.1
= control target key start
LH: loop header
LB: loop body
LE: loop exit
PB: predicated region body
PF: predicated region fallthrough
CT: control target
= control target key end

     0   :  { %18 = vsyncpa [#allocation4], 0  ;;  %s2654_s21 = smov 0   ;;  %s3153_s0 = inlined_call_operand.vmem [shape: bf16[1024,32], index: 0, kind: input, shape index: {}]   ;;  %s3154_s1 = inlined_call_operand.vmem [shape: bf16[32,32], index: 1, kind: input, shape index: {}]   ;;  %s3155_s2 = inlined_call_operand.vmem [shape: f32[1,32], index: 2, kind: input, shape index: {}]   ;;  %s3156_s3 = inlined_call_operand.vmem [shape: bf16[2,512], index: 3, kind: input, shape index: {}]   ;;  %s3157_s4 = inlined_call_operand.vmem [shape: bf16[32,512], index: 4, kind: input, shape index: {}]   ;;  %s3158_s5 = inlined_call_operand.vmem [shape: bf16[32,512], index: 5, kind: input, shape index: {}]   ;;  %s3159_s6 = inlined_call_operand.vmem [shape: f32[1,512], index: 6, kind: input, shape index: {}]   ;;  %s3160_s7 = inlined_call_operand.vmem [shape: bf16[512,128], index: 7, kind: input, shape index: {}]   ;;  %s3161_s8 = inlined_call_operand.vmem [shape: f32[1,128], index: 8, kind: input, shape index: {}]   ;;  %s3162_s9 = inlined_call_operand.vmem [shape: bf16[128,128], index: 9, kind: input, shape index: {}]   ;;  %s3163_s10 = inlined_call_operand.vmem [shape: f32[1,128], index: 10, kind: input, shape index: {}]   ;;  %s3164_s11 = inlined_call_operand.vmem [shape: f32[2,128], index: 11, kind: output, shape index: {0}]   ;;  %s3165_s12 = inlined_call_operand.hbm [shape: f32[2,128], index: 12, kind: output, shape index: {1}]  }
   0x1 LB: > { %s2660_s22 = sadd.s32 4294967295, %s2582_s21   ;;  %p2069_p0 = scmp.ge.s32.totalorder %s2582_s21, 1  ;;  %s2582_s21 = sphi %s2654_s21, %s24_s21  }
   0x2   : > { %p357_p1 = scmp.lt.s32.totalorder %s2582_s21, 3 }
   0x4   : > { %p358_p2 = pnand %p2069_p0, %p357_p1 }
   0x5   : > { %s2070_s25 = sshll.u32 (!%p358_p2), %s2660_s22, 6  ;;  %s2140_s18 = sshll.u32 (!%p358_p2), %s2660_s22, 1 }
   0x6   : > { %361 = sbr.rel (%p358_p2) target bundleno = 1199 (0x4af), region = 64  ;;  %p395_p3 = scmp.lt.s32.totalorder (!%p358_p2), %s2070_s25, 127 }
   0x7   : > { %s1242_s19 = scalar_lea.vmem (!%p358_p2), [#allocation2], %s2140_s18  ;;  %p2141_p4 = scmp.ne.s32.totalorder (!%p358_p2), %s2660_s22, 1 }
   0xb   : > { %v2450_v0 = vld [vmem:[%s3154_s1 + $0x8] sm:$0xff]   ;;  %v2451_v1 = vld [vmem:[%s3154_s1] sm:$0xff]   ;;  %s3167_s25 = smov (!%p395_p3, %s2070_s25), 127  ;;  %vm648_vm0 = vcmask 261120   ;;  %v2584_v34 = vmov 1966171168   ;;  %v1143_v36 = vlaneseq }
   0xc   : > { %2339 = vmatprep.subr.bf16.mxu0 %v2450_v0  ;;  %2427 = vmatprep.subr.bf16.mxu1 %v2450_v0  ;;  %s2071_s28 = sshll.u32 %s3167_s25, 2  ;;  %v1141_v35 = vunpack.c.l.s4 %v2584_v34  ;;  %v2139_v39 = vld.sshfl [vmem:[%s3156_s3] sm:$0x33 pattern:$0x75316420]  ;;  %vm1243_vm1 = vcmask 254976  }
   0xd   : > { %2340 = vmatpush3.bf16.msra.mxu0 %v2450_v0  ;;  %2429 = vmatpush3.bf16.msra.mxu1 %v2450_v0  ;;  %s2674_s13 = scalar_lea.vmem %s3153_s0, %s2071_s28  ;;  %v2740_v38 = vshrl.u32 %v1143_v36, 7  ;;  %v1139_v40 = vcombine.high %v2139_v39, %v2139_v39  ;;  %v2754_v45 = vld [vmem:[%s3155_s2] ss:$0 sm:$0xff] }
   0xe   : > { %2341 = vmatprep.subr.bf16.mxu0 %v2451_v1  ;;  %2428 = vmatprep.subr.bf16.mxu1 %v2451_v1  ;;  %v2452_v2 = vld [vmem:[%s2674_s13] sm:$0xff]   ;;  %v2453_v3 = vld [vmem:[%s2674_s13 + $0x8] sm:$0xff]   ;;  %v2454_v4 = vld [vmem:[%s2674_s13 + $0x10] sm:$0xff]   ;;  %v1142_v37 = vunpack.c.0.s8 %v1141_v35 }
   0xf   : > { %2343 = vmatprep.mubr.msk.bf16.mxu0 %vm648_vm0, %v2452_v2  ;;  %v2455_v5 = vld [vmem:[%s2674_s13 + $0x18] sm:$0xff]   ;;  %v2456_v6 = vld [vmem:[%s2674_s13 + $0x20] sm:$0xff]   ;;  %v2457_v7 = vld [vmem:[%s2674_s13 + $0x28] sm:$0xff]  }
  0x10   : > { %v2467_v8 = vld [vmem:[%s2674_s13 + $0xb0] sm:$0xff]   ;;  %v2469_v10 = vld [vmem:[%s2674_s13 + $0xb8] sm:$0xff]   ;;  %v2470_v11 = vld [vmem:[%s2674_s13 + $0xc0] sm:$0xff]   ;;  %v1145_v41 = vsub.s32 %v1142_v37, %v2740_v38 }
  0x11   : > { %2342 = vmatpush3.bf16.msra.mxu0 %v2451_v1  ;;  %2430 = vmatpush3.bf16.msra.mxu1 %v2451_v1  ;;  %v2458_v9 = vld [vmem:[%s2674_s13 + $0x30] sm:$0xff]   ;;  %v2459_v12 = vld [vmem:[%s2674_s13 + $0x38] sm:$0xff]   ;;  %v2460_v13 = vld [vmem:[%s2674_s13 + $0x40] sm:$0xff]  }
  0x12   : > { %2387 = vmatprep.mubr.msk.bf16.mxu1 %vm648_vm0, %v2467_v8  ;;  %v2471_v14 = vld [vmem:[%s2674_s13 + $0xc8] sm:$0xff]   ;;  %v2472_v15 = vld [vmem:[%s2674_s13 + $0xd0] sm:$0xff]   ;;  %v2473_v17 = vld [vmem:[%s2674_s13 + $0xd8] sm:$0xff]   ;;  %v2746_v42 = vrot.slane %v2139_v39, %v1145_v41  ;;  %v2748_v43 = vrot.slane %v1139_v40, %v1145_v41 }
  0x13   : > { %v2461_v16 = vld [vmem:[%s2674_s13 + $0x48] sm:$0xff]   ;;  %v2462_v18 = vld [vmem:[%s2674_s13 + $0x50] sm:$0xff]   ;;  %v2474_v19 = vld [vmem:[%s2674_s13 + $0xe0] sm:$0xff]  }
  0x14   : > { %2344 = vmatmul.mubr.msk.bf16.vlgmr.msra.gmra.mxu0 %vm648_vm0, %v2453_v3  ;;  %2388 = vmatmul.mubr.msk.bf16.vlgmr.msra.gmra.mxu1 %vm648_vm0, %v2469_v10  ;;  %v2463_v20 = vld [vmem:[%s2674_s13 + $0x58] sm:$0xff]   ;;  %v2476_v21 = vld [vmem:[%s2674_s13 + $0xe8] sm:$0xff]   ;;  %v2464_v22 = vld [vmem:[%s2674_s13 + $0x60] sm:$0xff]  }
  0x15   : > { %2347 = vmatprep.mubr.msk.bf16.mxu0 %vm648_vm0, %v2454_v4  ;;  %2391 = vmatprep.mubr.msk.bf16.mxu1 %vm648_vm0, %v2470_v11  ;;  %v2478_v23 = vld [vmem:[%s2674_s13 + $0xf0] sm:$0xff]   ;;  %v2465_v24 = vld [vmem:[%s2674_s13 + $0x68] sm:$0xff]   ;;  %v2480_v25 = vld [vmem:[%s2674_s13 + $0xf8] sm:$0xff]  }
  0x16   : > { %v2466_v26 = vld [vmem:[%s2674_s13 + $0x70] sm:$0xff]   ;;  %v2468_v27 = vld [vmem:[%s2674_s13 + $0x78] sm:$0xff]   ;;  %v2475_v28 = vld [vmem:[%s2674_s13 + $0x80] sm:$0xff]  }
  0x17   : > { %v2477_v29 = vld [vmem:[%s2674_s13 + $0x88] sm:$0xff]   ;;  %v2479_v30 = vld [vmem:[%s2674_s13 + $0x90] sm:$0xff]   ;;  %v2481_v31 = vld [vmem:[%s2674_s13 + $0x98] sm:$0xff]  }
  0x18   : > { %v2482_v32 = vld [vmem:[%s2674_s13 + $0xa0] sm:$0xff]   ;;  %v2483_v33 = vld [vmem:[%s2674_s13 + $0xa8] sm:$0xff]  }
  0x1c   : > { %2348 = vmatmul.mubr.msk.bf16.gmra.mxu0 %vm648_vm0, %v2455_v5  ;;  %2392 = vmatmul.mubr.msk.bf16.gmra.mxu1 %vm648_vm0, %v2471_v14 }
  0x1d   : > { %2351 = vmatprep.mubr.msk.bf16.mxu0 %vm648_vm0, %v2456_v6  ;;  %2395 = vmatprep.mubr.msk.bf16.mxu1 %vm648_vm0, %v2472_v15 }
  0x24   : > { %2352 = vmatmul.mubr.msk.bf16.gmra.mxu0 %vm648_vm0, %v2457_v7  ;;  %2396 = vmatmul.mubr.msk.bf16.gmra.mxu1 %vm648_vm0, %v2473_v17 }
  0x25   : > { %2355 = vmatprep.mubr.msk.bf16.mxu0 %vm648_vm0, %v2458_v9  ;;  %2399 = vmatprep.mubr.msk.bf16.mxu1 %vm648_vm0, %v2474_v19 }
  0x2c   : > { %2356 = vmatmul.mubr.msk.bf16.gmra.mxu0 %vm648_vm0, %v2459_v12  ;;  %2400 = vmatmul.mubr.msk.bf16.gmra.mxu1 %vm648_vm0, %v2476_v21 }
  0x2d   : > { %2359 = vmatprep.mubr.msk.bf16.mxu0 %vm648_vm0, %v2460_v13  ;;  %2403 = vmatprep.mubr.msk.bf16.mxu1 %vm648_vm0, %v2478_v23 }
  0x34   : > { %2360 = vmatmul.mubr.msk.bf16.gmra.mxu0 %vm648_vm0, %v2461_v16  ;;  %2404 = vmatmul.mubr.msk.bf16.gmra.mxu1 %vm648_vm0, %v2480_v25 }
  0x35   : > { %2363 = vmatprep.mubr.msk.bf16.mxu0 %vm648_vm0, %v2462_v18  ;;  %1192 = vmatprep.mubr.bf16.mxu1 %v2748_v43 }
  0x3c   : > { %2364 = vmatmul.mubr.msk.bf16.gmra.mxu0 %vm648_vm0, %v2463_v20 }
  0x3d   : > { %2367 = vmatprep.mubr.msk.bf16.mxu0 %vm648_vm0, %v2464_v22 }
  0x44   : > { %2368 = vmatmul.mubr.msk.bf16.gmra.mxu0 %vm648_vm0, %v2465_v24 }
  0x45   : > { %2371 = vmatprep.mubr.msk.bf16.mxu0 %vm648_vm0, %v2466_v26 }
  0x4c   : > { %2372 = vmatmul.mubr.msk.bf16.gmra.mxu0 %vm648_vm0, %v2468_v27 }
  0x4d   : > { %2375 = vmatprep.mubr.msk.bf16.mxu0 %vm648_vm0, %v2475_v28 }
  0x54   : > { %2376 = vmatmul.mubr.msk.bf16.gmra.mxu0 %vm648_vm0, %v2477_v29 }
  0x55   : > { %2379 = vmatprep.mubr.msk.bf16.mxu0 %vm648_vm0, %v2479_v30 }
  0x5c   : > { %2380 = vmatmul.mubr.msk.bf16.gmra.mxu0 %vm648_vm0, %v2481_v31 }
  0x5d   : > { %2383 = vmatprep.mubr.msk.bf16.mxu0 %vm648_vm0, %v2482_v32 }
  0x64   : > { %2384 = vmatmul.mubr.msk.bf16.gmra.mxu0 %vm648_vm0, %v2483_v33 }
  0xd4   : > { %v2345_v44 = vpop.f32.mrf.mxu0  ;;  %v2770_v6 = vpop.f32.mrf.mxu1 }
  0xd5   : > { %v788_v47 = vadd.f32 %v2345_v44, %v2754_v45 }
  0xd6   : > { %v779_v46 = vpop.f32.mrf.mxu0  ;;  %v2776_v11 = vpop.f32.mrf.mxu1 }
  0xd7   : > { %v780_v49 = vadd.f32 %v2754_v45, %v779_v46  ;;  %v1036_v52 = vmax.f32 %v788_v47, 0.0 }
  0xd8   : > { %v2346_v48 = vpop.f32.mrf.mxu0  ;;  %v2780_v14 = vpop.f32.mrf.mxu1 }
  0xd9   : > { %v791_v50 = vadd.f32 %v2346_v48, %v2754_v45  ;;  %v1034_v56 = vmax.f32 %v780_v49, 0.0 }
  0xda   : > { %v782_v51 = vpop.f32.mrf.mxu0  ;;  %v2784_v17 = vpop.f32.mrf.mxu1 }
  0xdb   : > { %v1037_v53 = vmax.f32 %v791_v50, 0.0  ;;  %v783_v54 = vadd.f32 %v2754_v45, %v782_v51 }
  0xdc   : > { %v2349_v55 = vpop.f32.mrf.mxu0  ;;  %v2786_v20 = vpop.f32.mrf.mxu1 }
  0xdd   : > { %v2760_v57 = vpack.c.bf16 %v1037_v53, %v1036_v52  ;;  %v1035_v58 = vmax.f32 %v783_v54, 0.0  ;;  %v804_v61 = vadd.f32 %v2349_v55, %v2754_v45 }
  0xde   : > { %v795_v59 = vpop.f32.mrf.mxu0  ;;  %v2790_v23 = vpop.f32.mrf.mxu1 }
  0xdf   : > { %v2762_v60 = vpack.c.bf16 %v1035_v58, %v1034_v56  ;;  %v796_v63 = vadd.f32 %v2754_v45, %v795_v59  ;;  %v1040_v2 = vmax.f32 %v804_v61, 0.0 }
  0xe0   : > { %v2350_v62 = vpop.f32.mrf.mxu0  ;;  %v2796_v26 = vpop.f32.mrf.mxu1 }
  0xe1   : > { %v807_v0 = vadd.f32 %v2350_v62, %v2754_v45  ;;  %v1038_v7 = vmax.f32 %v796_v63, 0.0 }
  0xe2   : > { %v798_v1 = vpop.f32.mrf.mxu0  ;;  %v2802_v29 = vpop.f32.mrf.mxu1 }
  0xe3   : > { %v1041_v3 = vmax.f32 %v807_v0, 0.0  ;;  %v799_v4 = vadd.f32 %v2754_v45, %v798_v1 }
  0xe4   : > { %v2768_v5 = vpop.f32.mrf.mxu0  ;;  %v2806_v32 = vpop.f32.mrf.mxu1 }
  0xe5   : > { %v2772_v8 = vpack.c.bf16 %v1041_v3, %v1040_v2  ;;  %v1039_v9 = vmax.f32 %v799_v4, 0.0 }
  0xe6   : > { %v2774_v10 = vpop.f32.mrf.mxu0  ;;  %v2810_v35 = vpop.f32.mrf.mxu1 }
  0xe7   : > { %v2778_v12 = vpack.c.bf16 %v1039_v9, %v1038_v7 }
  0xe8   : > { %v2354_v13 = vpop.f32.mrf.mxu0  ;;  %v2812_v39 = vpop.f32.mrf.mxu1 }
  0xea   : > { %v2782_v15 = vpop.f32.mrf.mxu0  ;;  %v2814_v44 = vpop.f32.mrf.mxu1 }
  0xec   : > { %v2357_v16 = vpop.f32.mrf.mxu0  ;;  %v2819_v51 = vpop.f32.mrf.mxu1 }
  0xed   : > { %v836_v49 = vadd.f32 %v2357_v16, %v2754_v45  ;;  %v823_v16 = vadd.f32 %v2354_v13, %v2754_v45 }
  0xee   : > { %v827_v18 = vpop.f32.mrf.mxu0  ;;  %v2829_v2 = vpop.f32.mrf.mxu1 }
  0xef   : > { %v1048_v63 = vmax.f32 %v836_v49, 0.0  ;;  %v828_v0 = vadd.f32 %v2754_v45, %v827_v18  ;;  %v820_v18 = vadd.f32 %v2768_v5, %v2754_v45 }
  0xf0   : > { %v2358_v19 = vpop.f32.mrf.mxu0 }
  0xf1   : > { %v839_v46 = vadd.f32 %v2358_v19, %v2754_v45 }
  0xf2   : > { %v830_v21 = vpop.f32.mrf.mxu0 }
  0xf3   : > { %v1049_v54 = vmax.f32 %v839_v46, 0.0  ;;  %v831_v55 = vadd.f32 %v2754_v45, %v830_v21 }
  0xf4   : > { %v2788_v22 = vpop.f32.mrf.mxu0 }
  0xf5   : > { %v1106_v19 = vpack.c.bf16 %v1049_v54, %v1048_v63  ;;  %v1047_v21 = vmax.f32 %v831_v55, 0.0 }
  0xf6   : > { %v2792_v24 = vpop.f32.mrf.mxu0 }
  0xf8   : > { %v2794_v25 = vpop.f32.mrf.mxu0 }
  0xfa   : > { %v2798_v27 = vpop.f32.mrf.mxu0 }
  0xfc   : > { %v2800_v28 = vpop.f32.mrf.mxu0 }
  0xfe   : > { %v2804_v30 = vpop.f32.mrf.mxu0 }
 0x100   : > { %v2366_v31 = vpop.f32.mrf.mxu0 }
 0x101   : > { %v871_v55 = vadd.f32 %v2366_v31, %v2754_v45 }
 0x102   : > { %v2808_v33 = vpop.f32.mrf.mxu0 }
 0x103   : > { %v863_v31 = vadd.f32 %v2754_v45, %v2808_v33 }
 0x104   : > { %v2369_v34 = vpop.f32.mrf.mxu0 }
 0x105   : > { %v884_v3 = vadd.f32 %v2369_v34, %v2754_v45  ;;  %v2838_v34 = vpop.f32.mrf.mxu1 }
 0x106   : > { %v875_v36 = vpop.f32.mrf.mxu0 }
 0x107   : > { %v876_v13 = vadd.f32 %v2754_v45, %v875_v36 }
 0x108   : > { %v2370_v37 = vpop.f32.mrf.mxu0 }
 0x109   : > { %v887_v58 = vadd.f32 %v2370_v37, %v2754_v45 }
 0x10a   : > { %v878_v40 = vpop.f32.mrf.mxu0 }
 0x10b   : > { %v879_v46 = vadd.f32 %v2754_v45, %v878_v40 }
 0x10c   : > { %v2373_v41 = vpop.f32.mrf.mxu0 }
 0x10d   : > { %v900_v48 = vadd.f32 %v2373_v41, %v2754_v45  ;;  %v1061_v41 = vmax.f32 %v887_v58, 0.0  ;;  %v1044_v58 = vmax.f32 %v820_v18, 0.0  ;;  %v852_v18 = vadd.f32 %v2788_v22, %v2754_v45 }
 0x10e   : > { %v891_v47 = vpop.f32.mrf.mxu0 }
 0x10f   : > { %v892_v52 = vadd.f32 %v2754_v45, %v891_v47  ;;  %v1064_v59 = vmax.f32 %v900_v48, 0.0  ;;  %v1046_v48 = vmax.f32 %v828_v0, 0.0 }
 0x110   : > { %v2374_v50 = vpop.f32.mrf.mxu0 }
 0x111   : > { %v903_v53 = vadd.f32 %v2374_v50, %v2754_v45  ;;  %v1062_v4 = vmax.f32 %v892_v52, 0.0  ;;  %v1060_v50 = vmax.f32 %v884_v3, 0.0  ;;  %v1045_v52 = vmax.f32 %v823_v16, 0.0 }
 0x112   : > { %v894_v56 = vpop.f32.mrf.mxu0  ;;  %v1105_v40 = vpack.c.bf16 %v1047_v21, %v1046_v48  ;;  %v1057_v3 = vmax.f32 %v871_v55, 0.0  ;;  %v855_v21 = vadd.f32 %v2794_v25, %v2754_v45  ;;  %v844_v25 = vadd.f32 %v2754_v45, %v2792_v24 }
 0x113   : > { %v1065_v61 = vmax.f32 %v903_v53, 0.0  ;;  %v895_v62 = vadd.f32 %v2754_v45, %v894_v56  ;;  %v815_v53 = vadd.f32 %v2754_v45, %v2782_v15  ;;  %v1112_v5 = vpack.c.bf16 %v1061_v41, %v1060_v50 }
 0x114   : > { %v2827_v1 = vpop.f32.mrf.mxu0  ;;  %v1059_v56 = vmax.f32 %v879_v46, 0.0  ;;  %v1058_v15 = vmax.f32 %v876_v13, 0.0  ;;  %v1104_v63 = vpack.c.bf16 %v1045_v52, %v1044_v58  ;;  %v1055_v46 = vmax.f32 %v863_v31, 0.0 }
 0x115   : > { %v1114_v7 = vpack.c.bf16 %v1065_v61, %v1064_v59  ;;  %v1063_v9 = vmax.f32 %v895_v62, 0.0  ;;  %v812_v59 = vadd.f32 %v2754_v45, %v2774_v10  ;;  %v2850_v61 = vpop.f32.mrf.mxu1  ;;  %v868_v62 = vadd.f32 %v2800_v28, %v2754_v45 }
 0x116   : > { %v2833_v37 = vpop.f32.mrf.mxu0  ;;  %v1043_v0 = vmax.f32 %v815_v53, 0.0  ;;  %v847_v50 = vadd.f32 %v2754_v45, %v2798_v27  ;;  %v1050_v27 = vmax.f32 %v844_v25, 0.0  ;;  %v964_v24 = vadd.f32 %v2770_v6, %v2754_v45 }
 0x117   : > { %v1113_v47 = vpack.c.bf16 %v1063_v9, %v1062_v4  ;;  %2242 = vmatprep.subr.bf16.mxu1 %v1114_v7  ;;  %v1111_v4 = vpack.c.bf16 %v1059_v56, %v1058_v15  ;;  %v1042_v10 = vmax.f32 %v812_v59, 0.0  ;;  %v2405_v9 = vpop.f32.mrf.mxu1  ;;  %v1056_v16 = vmax.f32 %v868_v62, 0.0 }
 0x118   : > { %2243 = vmatpush3.bf16.msra.mxu1 %v1106_v19  ;;  %v2840_v49 = vpop.f32.mrf.mxu0  ;;  %v860_v19 = vadd.f32 %v2754_v45, %v2804_v30  ;;  %v1053_v30 = vmax.f32 %v855_v21, 0.0  ;;  %v1051_v55 = vmax.f32 %v847_v50, 0.0  ;;  %v1028_v22 = vadd.f32 %v2405_v9, %v2754_v45 }
 0x119   : > { %2244 = vmatprep.subr.bf16.mxu1 %v1113_v47  ;;  %v1103_v28 = vpack.c.bf16 %v1043_v0, %v1042_v10  ;;  %v1110_v41 = vpack.c.bf16 %v1057_v3, %v1056_v16  ;;  %v1019_v33 = vpop.f32.mrf.mxu1  ;;  %v1080_v6 = vmax.f32 %v964_v24, 0.0  ;;  %v1015_v9 = vadd.f32 %v2838_v34, %v2754_v45 }
 0x11a   : > { %v2845_v54 = vpop.f32.mrf.mxu0  ;;  %v1054_v48 = vmax.f32 %v860_v19, 0.0  ;;  %v1107_v62 = vpack.c.bf16 %v1051_v55, %v1050_v27  ;;  %v1096_v15 = vmax.f32 %v1028_v22, 0.0  ;;  %v988_v22 = vadd.f32 %v2754_v45, %v2810_v35 }
 0x11b   : > { %v2406_v53 = vpop.f32.mrf.mxu1  ;;  %v980_v35 = vadd.f32 %v2786_v20, %v2754_v45  ;;  %v972_v20 = vadd.f32 %v2754_v45, %v2790_v23  ;;  %v908_v23 = vadd.f32 %v2754_v45, %v2833_v37  ;;  %v1154_v37 = vcombine.high %v2746_v42, %v2746_v42 }
 0x11c   : > { %2245 = vmatpush3.bf16.msra.mxu1 %v1105_v40  ;;  %v2852_v36 = vpop.f32.mrf.mxu0  ;;  %v1109_v13 = vpack.c.bf16 %v1055_v46, %v1054_v48  ;;  %v1052_v40 = vmax.f32 %v852_v18, 0.0  ;;  %v1031_v56 = vadd.f32 %v2406_v53, %v2754_v45  ;;  %v1004_v46 = vadd.f32 %v2754_v45, %v2829_v2 }
 0x11d   : > { %2246 = vmatprep.subr.bf16.mxu1 %v1112_v5  ;;  %v1022_v59 = vpop.f32.mrf.mxu1  ;;  %v1093_v18 = vmax.f32 %v1015_v9, 0.0  ;;  %v1007_v48 = vadd.f32 %v2754_v45, %v2850_v61  ;;  %v999_v61 = vadd.f32 %v2812_v39, %v2754_v45  ;;  %v991_v39 = vadd.f32 %v2754_v45, %v2814_v44 }
 0x11e   : > { %v2858_v7 = vpop.f32.mrf.mxu0  ;;  %v1108_v5 = vpack.c.bf16 %v1053_v30, %v1052_v40  ;;  %v1097_v0 = vmax.f32 %v1031_v56, 0.0  ;;  %v1023_v3 = vadd.f32 %v2754_v45, %v1022_v59  ;;  %v996_v30 = vadd.f32 %v2806_v32, %v2754_v45 }
 0x11f   : > { %v1090_v40 = vmax.f32 %v1004_v46, 0.0  ;;  %v932_v32 = vadd.f32 %v2852_v36, %v2754_v45  ;;  %v1089_v24 = vmax.f32 %v999_v61, 0.0  ;;  %v924_v36 = vadd.f32 %v2754_v45, %v2858_v7 }
 0x120   : > { %2247 = vmatpush3.bf16.msra.mxu1 %v1104_v63  ;;  %v2864_v47 = vpop.f32.mrf.mxu0  ;;  %v1020_v63 = vadd.f32 %v2754_v45, %v1019_v33  ;;  %v1130_v19 = vpack.c.bf16 %v1097_v0, %v1096_v15  ;;  %v919_v7 = vadd.f32 %v2840_v49, %v2754_v45 }
 0x121   : > { %2248 = vmatprep.subr.bf16.mxu1 %v1111_v4  ;;  %v959_v4 = vadd.f32 %v2754_v45, %v2784_v17  ;;  %v935_v56 = vadd.f32 %v2864_v47, %v2754_v45  ;;  %v1072_v15 = vmax.f32 %v932_v32, 0.0 }
 0x122   : > { %v2870_v52 = vpop.f32.mrf.mxu0  ;;  %v1094_v16 = vmax.f32 %v1020_v63, 0.0 }
 0x123   : > { %v1079_v17 = vmax.f32 %v959_v4, 0.0  ;;  %v1073_v63 = vmax.f32 %v935_v56, 0.0  ;;  %v927_v47 = vadd.f32 %v2754_v45, %v2870_v52  ;;  %v916_v4 = vadd.f32 %v2827_v1, %v2754_v45 }
 0x124   : > { %2249 = vmatpush3.bf16.msra.mxu1 %v1103_v28  ;;  %v2385_v58 = vpop.f32.mrf.mxu0  ;;  %v1095_v28 = vmax.f32 %v1023_v3, 0.0  ;;  %v983_v3 = vadd.f32 %v2796_v26, %v2754_v45  ;;  %v975_v26 = vadd.f32 %v2754_v45, %v2802_v29  ;;  %v1069_v1 = vmax.f32 %v919_v7, 0.0 }
 0x125   : > { %2250 = vmatprep.subr.bf16.mxu1 %v1110_v41  ;;  %v1118_v52 = vpack.c.bf16 %v1073_v63, %v1072_v15 }
 0x126   : > { %v939_v31 = vpop.f32.mrf.mxu0  ;;  %v1085_v9 = vmax.f32 %v983_v3, 0.0 }
 0x128   : > { %2251 = vmatpush3.bf16.msra.mxu1 %v2772_v8  ;;  %v967_v8 = vadd.f32 %v2780_v14, %v2754_v45  ;;  %v1012_v14 = vadd.f32 %v2819_v51, %v2754_v45  ;;  %v2386_v21 = vpop.f32.mrf.mxu0  ;;  %v948_v51 = vadd.f32 %v2385_v58, %v2754_v45 }
 0x129   : > { %2252 = vmatprep.subr.bf16.mxu1 %v1109_v13  ;;  %v951_v34 = vadd.f32 %v2386_v21, %v2754_v45  ;;  %v940_v13 = vadd.f32 %v2754_v45, %v939_v31  ;;  %v1086_v31 = vmax.f32 %v988_v22, 0.0  ;;  %v1082_v21 = vmax.f32 %v972_v20, 0.0 }
 0x12a   : > { %v1081_v10 = vmax.f32 %v967_v8, 0.0  ;;  %v1092_v33 = vmax.f32 %v1012_v14, 0.0  ;;  %v1076_v2 = vmax.f32 %v948_v51, 0.0  ;;  %v1084_v14 = vmax.f32 %v980_v35, 0.0 }
 0x12b   : > { %v1077_v25 = vmax.f32 %v951_v34, 0.0  ;;  %v1074_v58 = vmax.f32 %v940_v13, 0.0 }
 0x12c   : > { %2253 = vmatpush3.bf16.msra.mxu1 %v2778_v12  ;;  %v956_v12 = vadd.f32 %v2754_v45, %v2776_v11  ;;  %v1122_v41 = vpack.c.bf16 %v1081_v10, %v1080_v6  ;;  %v1128_v55 = vpack.c.bf16 %v1093_v18, %v1092_v33  ;;  %v1070_v6 = vmax.f32 %v924_v36, 0.0 }
 0x12d   : > { %2254 = vmatprep.subr.bf16.mxu1 %v1108_v5  ;;  %v1091_v5 = vmax.f32 %v1007_v48, 0.0  ;;  %v1120_v27 = vpack.c.bf16 %v1077_v25, %v1076_v2  ;;  %v1071_v10 = vmax.f32 %v927_v47, 0.0 }
 0x12e   : > { %v1078_v11 = vmax.f32 %v956_v12, 0.0  ;;  %v1087_v12 = vmax.f32 %v991_v39, 0.0 }
 0x12f   : > { %v1127_v8 = vpack.c.bf16 %v1091_v5, %v1090_v40  ;;  %v1117_v49 = vpack.c.bf16 %v1071_v10, %v1070_v6 }
 0x130   : > { %2255 = vmatpush3.bf16.msra.mxu1 %v2760_v57  ;;  %v1155_v57 = vcombine.high %v2748_v43, %v2748_v43  ;;  %v942_v43 = vpop.f32.mrf.mxu0  ;;  %v1121_v50 = vpack.c.bf16 %v1079_v17, %v1078_v11  ;;  %v1083_v11 = vmax.f32 %v975_v26, 0.0  ;;  %v1066_v17 = vmax.f32 %v908_v23, 0.0 }
 0x131   : > { %2256 = vmatprep.subr.bf16.mxu1 %v1107_v62  ;;  %v943_v53 = vadd.f32 %v2754_v45, %v942_v43  ;;  %v1088_v62 = vmax.f32 %v996_v30, 0.0 }
 0x132   : > { %v1123_v46 = vpack.c.bf16 %v1083_v11, %v1082_v21 }
 0x133   : > { %v1075_v59 = vmax.f32 %v943_v53, 0.0  ;;  %v1126_v44 = vpack.c.bf16 %v1089_v24, %v1088_v62 }
 0x134   : > { %2257 = vmatpush3.bf16.msra.mxu1 %v2762_v60  ;;  %v1129_v60 = vpack.c.bf16 %v1095_v28, %v1094_v16  ;;  %v1125_v16 = vpack.c.bf16 %v1087_v12, %v1086_v31  ;;  %v911_v28 = vadd.f32 %v2754_v45, %v2845_v54 }
 0x135   : > { %2264 = vmatprep.subr.bf16.mxu1 %v1130_v19  ;;  %v1119_v0 = vpack.c.bf16 %v1075_v59, %v1074_v58  ;;  %v1068_v19 = vmax.f32 %v916_v4, 0.0 }
 0x136   : > { %v1067_v29 = vmax.f32 %v911_v28, 0.0 }
 0x137   : > { %1193 = vmatmul.mubr.bf16.vlgmr.msra.gmra.mxu1 %v2746_v42 }
 0x138   : > { %2265 = vmatpush3.bf16.msra.mxu1 %v1122_v41  ;;  %1232 = vmatprep.mubr.bf16.mxu1 %v1155_v57  ;;  %v1124_v57 = vpack.c.bf16 %v1085_v9, %v1084_v14  ;;  %v1116_v41 = vpack.c.bf16 %v1069_v1, %v1068_v19  ;;  %v1115_v51 = vpack.c.bf16 %v1067_v29, %v1066_v17 }
 0x139   : > { %2266 = vmatprep.subr.bf16.mxu1 %v1129_v60 }
 0x13c   : > { %2267 = vmatpush3.bf16.msra.mxu1 %v1121_v50 }
 0x13d   : > { %2268 = vmatprep.subr.bf16.mxu1 %v1128_v55 }
 0x140   : > { %2269 = vmatpush3.bf16.msra.mxu1 %v1120_v27 }
 0x141   : > { %2270 = vmatprep.subr.bf16.mxu1 %v1127_v8 }
 0x144   : > { %2271 = vmatpush3.bf16.msra.mxu1 %v1119_v0 }
 0x145   : > { %2272 = vmatprep.subr.bf16.mxu1 %v1126_v44 }
 0x148   : > { %2273 = vmatpush3.bf16.msra.mxu1 %v1118_v52 }
 0x149   : > { %2274 = vmatprep.subr.bf16.mxu1 %v1125_v16 }
 0x14c   : > { %2275 = vmatpush3.bf16.msra.mxu1 %v1117_v49 }
 0x14d   : > { %2276 = vmatprep.subr.bf16.mxu1 %v1124_v57 }
 0x150   : > { %2277 = vmatpush3.bf16.msra.mxu1 %v1116_v41 }
 0x151   : > { %2278 = vmatprep.subr.bf16.mxu1 %v1123_v46 }
 0x154   : > { %2279 = vmatpush3.bf16.msra.mxu1 %v1115_v51 }
 0x157   : > { %1233 = vmatmul.mubr.bf16.vlgmr.msra.gmra.mxu1 %v1154_v37 }
 0x1f7   : > { %v2258_v45 = vpop.f32.mrf.mxu1 }
 0x1f9   : > { %v2259_v54 = vpop.f32.mrf.mxu1 }
 0x1fa   : > { %v2260_v60 = vadd.f32 %v2259_v54, %v2258_v45 }
 0x1fb   : > { %v2261_v34 = vpop.f32.mrf.mxu1 }
 0x1fd   : > { %v2262_v33 = vpop.f32.mrf.mxu1 }
 0x217   : > { %v2280_v18 = vpop.f32.mrf.mxu1 }
 0x219   : > { %v2281_v48 = vpop.f32.mrf.mxu1 }
 0x21a   : > { %v2282_v43 = vadd.f32 %v2281_v48, %v2280_v18 }
 0x21b   : > { %v2283_v50 = vpop.f32.mrf.mxu1 }
 0x21c   : > { %v1235_v30 = vadd.f32 %v2282_v43, %v2260_v60  ;;  %1248 = sbr.rel (%p2141_p4) target bundleno = 1184 (0x4a0), region = 68 }
 0x21d   : > { %v2284_v2 = vpop.f32.mrf.mxu1 }
 0x21e   : > { %v1240_v13 = vmul.f32 0.00390625, %v1235_v30 }
 0x220   : > { %1244 = vst.msk [vmem:[%s1242_s19] sm:$0x3] %vm1243_vm1, %v1240_v13 }
 0x221   : > { %v2484_v42 = vld [vmem:[%s3158_s5 + $0x24] ss:$16 sps:$4 sm:$0xff]   ;;  %v2486_v25 = vld [vmem:[%s3158_s5 + $0x20] ss:$16 sps:$4 sm:$0xff]   ;;  %v2585_v53 = vmov 0   ;;  %v2508_v59 = vld [vmem:[%s3160_s7 + $0x78] sm:$0xff]  }
 0x222   : > { %1345 = vmatprep.mubr.bf16.mxu1 %v2585_v53  ;;  %1325 = vmatprep.subr.bf16.mxu1 %v2484_v42  ;;  %v2487_v61 = vld [vmem:[%s3158_s5 + $0x4] ss:$16 sps:$4 sm:$0xff]   ;;  %v2489_v40 = vld [vmem:[%s3158_s5] ss:$16 sps:$4 sm:$0xff]   ;;  %v2492_v5 = vld [vmem:[%s3158_s5 + $0x2c] ss:$16 sps:$4 sm:$0xff]  }
 0x223   : > { %1326 = vmatpush1.bf16.msra.mxu1 %v2486_v25  ;;  %v2490_v32 = vld [vmem:[%s3158_s5 + $0x28] ss:$16 sps:$4 sm:$0xff]   ;;  %v2495_v56 = vld [vmem:[%s3158_s5 + $0xc] ss:$16 sps:$4 sm:$0xff]   ;;  %v2498_v27 = vld [vmem:[%s3157_s4 + $0x24] ss:$16 sps:$4 sm:$0xff]   ;;  %2286 = vmatprep.subr.bf16.mxu0 %v2508_v59 }
 0x224   : > { %1327 = vmatprep.subr.bf16.mxu1 %v2487_v61  ;;  %v2493_v58 = vld [vmem:[%s3158_s5 + $0x8] ss:$16 sps:$4 sm:$0xff]   ;;  %v2496_v62 = vld [vmem:[%s3157_s4 + $0x20] ss:$16 sps:$4 sm:$0xff]   ;;  %v2501_v39 = vld [vmem:[%s3157_s4 + $0x4] ss:$16 sps:$4 sm:$0xff]  }
 0x225   : > { %v2509_v24 = vld [vmem:[%s3160_s7 + $0x38] sm:$0xff]   ;;  %v2499_v8 = vld [vmem:[%s3157_s4] ss:$16 sps:$4 sm:$0xff]   ;;  %v2512_v44 = vld [vmem:[%s3160_s7 + $0x68] sm:$0xff]   ;;  %v2586_v34 = vmov 0.0   ;;  %v1524_v30 = vsub.s32 0, %v2740_v38 }
 0x226   : > { %2287 = vmatpush3.bf16.msra.mxu0 %v2509_v24  ;;  %v2504_v15 = vld [vmem:[%s3157_s4 + $0x2c] ss:$16 sps:$4 sm:$0xff]   ;;  %v2502_v36 = vld [vmem:[%s3157_s4 + $0x28] ss:$16 sps:$4 sm:$0xff]   ;;  %v2510_v3 = vld [vmem:[%s3160_s7 + $0x70] sm:$0xff]   ;;  %v1528_v42 = vsub.s32 1, %v2740_v38 }
 0x227   : > { %v1251_v55 = vld [vmem:[#allocation2 + $0x2] sm:$0x3]  ;;  %1328 = vmatpush1.bf16.msra.mxu1 %v2489_v40  ;;  %v1249_v35 = vld [vmem:[#allocation2] sm:$0x3]  ;;  %v2507_v47 = vld [vmem:[%s3157_s4 + $0xc] ss:$16 sps:$4 sm:$0xff]   ;;  %2288 = vmatprep.subr.bf16.mxu0 %v2510_v3 }
 0x228   : > { %v1261_v22 = vpack.c.bf16 %v1251_v55, %v1251_v55  ;;  %1366 = vmatprep.subr.bf16.mxu1 %v2492_v5  ;;  %v1252_v63 = vpack.c.bf16 %v1249_v35, %v1249_v35  ;;  %v2505_v0 = vld [vmem:[%s3157_s4 + $0x8] ss:$16 sps:$4 sm:$0xff]   ;;  %v2511_v31 = vld [vmem:[%s3160_s7 + $0x30] sm:$0xff]   ;;  %v2516_v7 = vld [vmem:[%s3160_s7 + $0x60] sm:$0xff]   ;;  %vm2587_vm2 = vmmov 0  }
 0x229   : > { %v2513_v12 = vld [vmem:[%s3160_s7 + $0xf8] sm:$0xff]   ;;  %v2514_v20 = vld [vmem:[%s3160_s7 + $0x28] sm:$0xff]   ;;  %v2517_v6 = vld [vmem:[%s3160_s7 + $0xf0] sm:$0xff]  }
 0x22a   : > { %2150 = vmatmul.mubr.msk.bf16.vlgmr.msra.gmra.mxu1 %vm648_vm0, %v1261_v22  ;;  %2289 = vmatpush3.bf16.msra.mxu0 %v2511_v31  ;;  %v2515_v4 = vld [vmem:[%s3160_s7 + $0xb8] sm:$0xff]   ;;  %v2518_v52 = vld [vmem:[%s3160_s7 + $0x20] sm:$0xff]   ;;  %v2519_v10 = vld [vmem:[%s3160_s7 + $0xb0] sm:$0xff]  }
 0x22b   : > { %1367 = vmatpush1.bf16.msra.mxu1 %v2490_v32  ;;  %1386 = vmatprep.mubr.bf16.mxu1 %v2585_v53  ;;  %v2520_v14 = vld [vmem:[%s3160_s7 + $0x58] sm:$0xff]   ;;  %v2521_v9 = vld [vmem:[%s3160_s7 + $0xe8] sm:$0xff]   ;;  %v2524_v19 = vld [vmem:[%s3160_s7 + $0x50] sm:$0xff]  }
 0x22c   : > { %1368 = vmatprep.subr.bf16.mxu1 %v2495_v56  ;;  %2290 = vmatprep.subr.bf16.mxu0 %v2512_v44  ;;  %v2522_v26 = vld [vmem:[%s3160_s7 + $0x18] sm:$0xff]   ;;  %v2523_v16 = vld [vmem:[%s3160_s7 + $0xa8] sm:$0xff]   ;;  %v2525_v23 = vld [vmem:[%s3160_s7 + $0xe0] sm:$0xff]   ;;  %v1532_v56 = vsub.s32 2, %v2740_v38 }
 0x22d   : > { %v2526_v1 = vld [vmem:[%s3160_s7 + $0x10] sm:$0xff]   ;;  %v2527_v28 = vld [vmem:[%s3160_s7 + $0xa0] sm:$0xff]   ;;  %v2528_v49 = vld [vmem:[%s3160_s7 + $0x48] sm:$0xff]  }
 0x22e   : > { %2291 = vmatpush3.bf16.msra.mxu0 %v2514_v20  ;;  %v2529_v21 = vld [vmem:[%s3160_s7 + $0xd8] sm:$0xff]   ;;  %v2530_v57 = vld [vmem:[%s3160_s7 + $0x8] sm:$0xff]   ;;  %v2532_v17 = vld [vmem:[%s3160_s7 + $0x40] sm:$0xff]  }
 0x22f   : > { %1369 = vmatpush1.bf16.msra.mxu1 %v2493_v58  ;;  %2292 = vmatprep.subr.bf16.mxu0 %v2516_v7  ;;  %v2531_v11 = vld [vmem:[%s3160_s7 + $0x98] sm:$0xff]   ;;  %v2533_v41 = vld [vmem:[%s3160_s7 + $0xd0] sm:$0xff]   ;;  %v2534_v29 = vld [vmem:[%s3160_s7] sm:$0xff]  }
 0x230   : > { %1450 = vmatprep.subr.bf16.mxu1 %v2498_v27  ;;  %v2535_v46 = vld [vmem:[%s3160_s7 + $0x90] sm:$0xff]   ;;  %v2536_v51 = vld [vmem:[%s3160_s7 + $0xc8] sm:$0xff]   ;;  %v2538_v45 = vld [vmem:[%s3160_s7 + $0xc0] sm:$0xff]   ;;  %v1536_v27 = vsub.s32 3, %v2740_v38 }
 0x231   : > { %v2537_v37 = vld [vmem:[%s3160_s7 + $0x88] sm:$0xff]   ;;  %v2539_v54 = vld [vmem:[%s3160_s7 + $0x80] sm:$0xff]   ;;  %v2541_v20 = vld [vmem:[%s3162_s9 + $0x30] sm:$0xff]  }
 0x232   : > { %2151 = vmatmul.mubr.msk.bf16.vlgmr.msra.gmra.mxu1 %vm648_vm0, %v1261_v22  ;;  %2293 = vmatpush3.bf16.msra.mxu0 %v2518_v52  ;;  %v1520_v13 = vld [vmem:[%s3159_s6] sm:$0xf] }
 0x233   : > { %1451 = vmatpush1.bf16.msra.mxu1 %v2496_v62  ;;  %1470 = vmatprep.mubr.bf16.mxu1 %v2585_v53  ;;  %v1529_v55 = vrot.slane %v1520_v13, %v1528_v42 }
 0x234   : > { %1452 = vmatprep.subr.bf16.mxu1 %v2501_v39  ;;  %2294 = vmatprep.subr.bf16.mxu0 %v2520_v14  ;;  %v1533_v39 = vrot.slane %v1520_v13, %v1532_v56 }
 0x236   : > { %2295 = vmatpush3.bf16.msra.mxu0 %v2522_v26  ;;  %v2544_v26 = vld [vmem:[%s3162_s9 + $0x18] sm:$0xff]  }
 0x237   : > { %1453 = vmatpush1.bf16.msra.mxu1 %v2499_v8  ;;  %2296 = vmatprep.subr.bf16.mxu0 %v2524_v19  ;;  %v2546_v19 = vld [vmem:[%s3162_s9 + $0x8] sm:$0xff]  }
 0x238   : > { %1491 = vmatprep.subr.bf16.mxu1 %v2504_v15 }
 0x23a   : > { %2160 = vmatmul.mubr.msk.bf16.vlgmr.msra.gmra.mxu1 %vm648_vm0, %v1252_v63  ;;  %2297 = vmatpush3.bf16.msra.mxu0 %v2526_v1 }
 0x23b   : > { %1492 = vmatpush1.bf16.msra.mxu1 %v2502_v36  ;;  %1511 = vmatprep.mubr.bf16.mxu1 %v2585_v53  ;;  %v1525_v53 = vrot.slane %v1520_v13, %v1524_v30  ;;  %v1537_v36 = vrot.slane %v1520_v13, %v1536_v27 }
 0x23c   : > { %1493 = vmatprep.subr.bf16.mxu1 %v2507_v47  ;;  %2298 = vmatprep.subr.bf16.mxu0 %v2528_v49  ;;  %v2540_v47 = vld [vmem:[%s3162_s9 + $0x38] sm:$0xff]  }
 0x23e   : > { %2299 = vmatpush3.bf16.msra.mxu0 %v2530_v57 }
 0x23f   : > { %1494 = vmatpush1.bf16.msra.mxu1 %v2505_v0  ;;  %2300 = vmatprep.subr.bf16.mxu0 %v2532_v17 }
 0x240   : > { %2308 = vmatprep.subr.bf16.mxu1 %v2513_v12 }
 0x242   : > { %2161 = vmatmul.mubr.msk.bf16.vlgmr.msra.gmra.mxu1 %vm648_vm0, %v1252_v63  ;;  %2301 = vmatpush3.bf16.msra.mxu0 %v2534_v29 }
 0x243   : > { %2309 = vmatpush3.bf16.msra.mxu1 %v2515_v4  ;;  %2407 = vmatprep.subr.bf16.mxu0 %v2586_v34 }
 0x244   : > { %2310 = vmatprep.subr.bf16.mxu1 %v2517_v6 }
 0x247   : > { %2311 = vmatpush3.bf16.msra.mxu1 %v2519_v10  ;;  %v2542_v10 = vld [vmem:[%s3162_s9 + $0x28] sm:$0xff]  }
 0x248   : > { %2312 = vmatprep.subr.bf16.mxu1 %v2521_v9  ;;  %v2543_v9 = vld [vmem:[%s3162_s9 + $0x20] sm:$0xff]  }
 0x24b   : > { %2313 = vmatpush3.bf16.msra.mxu1 %v2523_v16  ;;  %v2545_v16 = vld [vmem:[%s3162_s9 + $0x10] sm:$0xff]  }
 0x24c   : > { %2314 = vmatprep.subr.bf16.mxu1 %v2525_v23  ;;  %v2547_v23 = vld [vmem:[%s3162_s9] sm:$0xff]  }
 0x24f   : > { %2315 = vmatpush3.bf16.msra.mxu1 %v2527_v28 }
 0x250   : > { %2316 = vmatprep.subr.bf16.mxu1 %v2529_v21 }
 0x253   : > { %2317 = vmatpush3.bf16.msra.mxu1 %v2531_v11  ;;  %v2162_v11 = vld [vmem:[%s3161_s8] ss:$0 sm:$0xff] }
 0x254   : > { %2318 = vmatprep.subr.bf16.mxu1 %v2533_v41 }
 0x257   : > { %2319 = vmatpush3.bf16.msra.mxu1 %v2535_v46 }
 0x258   : > { %2320 = vmatprep.subr.bf16.mxu1 %v2536_v51 }
 0x25b   : > { %2321 = vmatpush3.bf16.msra.mxu1 %v2537_v37 }
 0x25c   : > { %2322 = vmatprep.subr.bf16.mxu1 %v2538_v45 }
 0x25f   : > { %2323 = vmatpush3.bf16.msra.mxu1 %v2539_v54 }
 0x2ea   : > { %v1347_v33 = vpop.f32.mrf.mxu1 }
 0x2ec   : > { %v1349_v18 = vpop.f32.mrf.mxu1 }
 0x2ee   : > { %v1351_v48 = vpop.f32.mrf.mxu1 }
 0x2f0   : > { %v1352_v60 = vpop.f32.mrf.mxu1 }
 0x2f2   : > { %v1388_v43 = vpop.f32.mrf.mxu1 }
 0x2f4   : > { %v1390_v50 = vpop.f32.mrf.mxu1 }
 0x2f6   : > { %v1392_v2 = vpop.f32.mrf.mxu1 }
 0x2f8   : > { %v1393_v25 = vpop.f32.mrf.mxu1 }
 0x2fa   : > { %v1472_v61 = vpop.f32.mrf.mxu1 }
 0x2fb   : > { %v1473_v40 = vadd.f32 %v1472_v61, %v1347_v33 }
 0x2fc   : > { %v1474_v5 = vpop.f32.mrf.mxu1 }
 0x2fd   : > { %v1542_v22 = vadd.f32 %v1525_v53, %v1473_v40  ;;  %v1475_v32 = vadd.f32 %v1474_v5, %v1349_v18 }
 0x2fe   : > { %v1476_v58 = vpop.f32.mrf.mxu1 }
 0x2ff   : > { %v1543_v59 = vadd.f32 %v1529_v55, %v1475_v32  ;;  %v1546_v62 = vmax.f32 %v1542_v22, 0.0 }
 0x300   : > { %v1477_v24 = vpop.f32.mrf.mxu1 }
 0x301   : > { %v1547_v8 = vmax.f32 %v1543_v59, 0.0  ;;  %v1550_v0 = vpack.c.bf16 %v1546_v62, %v1546_v62 }
 0x302   : > { %v1513_v35 = vpop.f32.mrf.mxu1 }
 0x303   : > { %v1514_v15 = vadd.f32 %v1513_v35, %v1388_v43  ;;  %v1551_v63 = vpack.c.bf16 %v1547_v8, %v1547_v8 }
 0x304   : > { %v1515_v3 = vpop.f32.mrf.mxu1 }
 0x305   : > { %v1544_v31 = vadd.f32 %v1533_v39, %v1514_v15  ;;  %v1516_v44 = vadd.f32 %v1515_v3, %v1390_v50  ;;  %1849 = vmatprep.mubr.bf16.mxu0 %v1551_v63 }
 0x306   : > { %v1517_v12 = vpop.f32.mrf.mxu1  ;;  %1850 = vmatmul.mubr.bf16.vlgmr.msra.gmra.mxu0 %v1550_v0 }
 0x307   : > { %v1545_v38 = vadd.f32 %v1537_v36, %v1516_v44  ;;  %2408 = vmatpush3.bf16.msra.mxu0 %v2540_v47  ;;  %v1548_v4 = vmax.f32 %v1544_v31, 0.0  ;;  %2423 = vmatprep.mubr.msk.bf16.mxu0 %vm2587_vm2, %v2586_v34 }
 0x308   : > { %v1518_v7 = vpop.f32.mrf.mxu1  ;;  %2409 = vmatprep.subr.bf16.mxu0 %v2586_v34 }
 0x309   : > { %v1549_v6 = vmax.f32 %v1545_v38, 0.0  ;;  %v1552_v14 = vpack.c.bf16 %v1548_v4, %v1548_v4 }
 0x30b   : > { %v1553_v52 = vpack.c.bf16 %v1549_v6, %v1549_v6  ;;  %2410 = vmatpush3.bf16.msra.mxu0 %v2541_v20 }
 0x30c   : > { %2411 = vmatprep.subr.bf16.mxu0 %v2586_v34 }
 0x30d   : > { %1889 = vmatprep.mubr.bf16.mxu1 %v1553_v52 }
 0x30e   : > { %1890 = vmatmul.mubr.bf16.vlgmr.msra.gmra.mxu1 %v1552_v14 }
 0x30f   : > { %2412 = vmatpush3.bf16.msra.mxu0 %v2542_v10 }
 0x310   : > { %2413 = vmatprep.subr.bf16.mxu0 %v2586_v34 }
 0x313   : > { %2414 = vmatpush3.bf16.msra.mxu0 %v2543_v9 }
 0x314   : > { %2415 = vmatprep.subr.bf16.mxu0 %v2586_v34 }
 0x317   : > { %2416 = vmatpush3.bf16.msra.mxu0 %v2544_v26 }
 0x318   : > { %2417 = vmatprep.subr.bf16.mxu0 %v2586_v34 }
 0x31b   : > { %2418 = vmatpush3.bf16.msra.mxu0 %v2545_v16 }
 0x31c   : > { %2419 = vmatprep.subr.bf16.mxu0 %v2586_v34 }
 0x31f   : > { %2420 = vmatpush3.bf16.msra.mxu0 %v2546_v19 }
 0x320   : > { %2421 = vmatprep.subr.bf16.mxu0 %v2586_v34  ;;  %v2195_v34 = vld [vmem:[%s3163_s10] ss:$0 sm:$0xff] }
 0x323   : > { %2422 = vmatpush3.bf16.msra.mxu0 %v2547_v23 }
 0x3c6   : > { %v2302_v1 = vpop.f32.mrf.mxu0 }
 0x3c8   : > { %v2303_v28 = vpop.f32.mrf.mxu0 }
 0x3c9   : > { %v2304_v57 = vadd.f32 %v2303_v28, %v2302_v1 }
 0x3ca   : > { %v2305_v49 = vpop.f32.mrf.mxu0 }
 0x3cb   : > { %v1852_v29 = vadd.f32 %v2304_v57, %v2162_v11 }
 0x3cc   : > { %v2306_v21 = vpop.f32.mrf.mxu0 }
 0x3ce   : > { %v2324_v17 = vpop.f32.mrf.mxu1 }
 0x3d0   : > { %v2325_v41 = vpop.f32.mrf.mxu1 }
 0x3d1   : > { %v2326_v46 = vadd.f32 %v2325_v41, %v2324_v17 }
 0x3d2   : > { %v2327_v51 = vpop.f32.mrf.mxu1 }
 0x3d3   : > { %v1892_v37 = vadd.f32 %v2326_v46, %v1852_v29 }
 0x3d4   : > { %v2328_v45 = vpop.f32.mrf.mxu1 }
 0x3d5   : > { %v1897_v54 = vmax.f32 %v1892_v37, 0.0 }
 0x3d7   : > { %1898 = vst [vmem:[#allocation3] sm:$0x3] %v1897_v54  ;;  %v1899_v33 = vpack.c.bf16 %v1897_v54, %v1897_v54 }
 0x3d9   : > { %2424 = vmatmul.mubr.bf16.vlgmr.msra.gmra.mxu0 %v1899_v33 }
 0x499   : > { %v2005_v18 = vpop.f32.mrf.mxu0 }
 0x49a   : > { %v2006_v48 = vadd.f32 %v2195_v34, %v2005_v18 }
 0x49b   : > { %v2425_v60 = vpop.f32.mrf.mxu0 }
 0x49c   : > { %2011 = vst [vmem:[%s3164_s11] sm:$0x3] %v2006_v48 }
 0x49d   : > { %v2008_v43 = vpop.f32.mrf.mxu0 }
 0x49f   : > { %v2426_v50 = vpop.f32.mrf.mxu0 }
 0x4a0 PF: > { %p2435_p5 = scmp.eq.s32.totalorder %s2660_s22, 1  ;;  %s2588_s30 = smov [#allocation3]  }
 0x4a1   : > { %s2022_s13 = sshll.u32 %s2588_s30, 4  ;;  %s2023_s13 = int_to_ptr.vmem [resolvable:$true] %s2022_s13 }
 0x4a2   : > { %s2548_s14 = scalar_lea.vmem %s2023_s13, 32  ;;  %p2555_p9 = scmp.lt.s32.totalorder %s2023_s13, %s2023_s13 }
 0x4a3   : > { %p2549_p6 = scmp.ne.s32.totalorder %s2023_s13, %s2548_s14  ;;  %p2556_p10 = scmp.lt.s32.totalorder %s2548_s14, %s2548_s14 }
 0x4a5   : > { %p2550_p7 = pnand %p2549_p6, %p2435_p5  ;;  %p2557_p11 = por %p2556_p10, %p2555_p9 }
 0x4a7   : > { %p2551_p8 = pneg %p2550_p7 }
 0x4a9   : > { %p2558_p12 = pnand %p2557_p11, %p2551_p8 }
 0x4ab   : > { %2561 = shalt.err (!%p2558_p12)
}
 0x4ac   : > { %2432 = dma.vmem_to_hbm [thread:$0]  (%p2435_p5), %s2023_s13, 32, %s3165_s12, [#allocation4]  }
 0x4ad   : > { %2577 = dma.done.wait (%p2435_p5), [#allocation4], 32  }
 0x4ae   : > { %2579 = vsyncadd (%p2435_p5), [#allocation4], 4294967264 }
 0x4af PF: > { %s24_s21 = sadd.s32 1, %s2582_s21  }
 0x4b0   : > { %p21_p13 = scmp.ge.s32.totalorder %s24_s21, 4  }
 0x4b2   :  { %23 = sbr.rel (!%p21_p13) target bundleno = 1 (0x1), region = 105 }
 0x4b7   :  { %2038 = vsyncpa [#allocation4], 1 }
 0x4b8   :  { %2040 = vsyncpa [#allocation4 + $0x1], 1 }

</bundles_post_ra>
